<compile_context>
chip_gen: v7x
topology: tpu7x:2x2x1
jax: 0.10.0
libtpu: 0.0.40
codegen_flags: <defaults>
</compile_context>

<pallas_src>
import jax
import jax.numpy as jnp
from jax.experimental import pallas as pl
from jax.experimental.pallas import tpu as pltpu


def _round_up(v, m):
    return ((v + m - 1) // m) * m


def _vmem_limit_bytes():
    """Generation-aware VMEM ceiling: ~75% of physical, capped at 96 MiB."""
    try:
        cap = pltpu.get_tpu_info().vmem_capacity_bytes
    except Exception:
        cap = 64 << 20          # conservative fallback (v7x per-TC VMEM)
    return max(32 << 20, min(int(cap) * 3 // 4, 96 << 20))


def film_kernel(x_ref, w_ref, ff_ref, o_ref):
    # x_ref:  (1, TN, Din)
    # w_ref:  (Din, TH)   resident across the inner N axis
    # ff_ref: (1, 2, TH)  row 0 = freq, row 1 = freq*bias + phase_shift
    # o_ref:  (1, TN, TH)
    h = jnp.dot(x_ref[0], w_ref[...], preferred_element_type=jnp.float32)  # MXU
    ff = ff_ref[0]                       # (2, TH)
    freq = ff[0:1, :]                    # broadcast over the TN rows
    fused = ff[1:2, :]
    o_ref[0] = jnp.sin(freq * h + fused).astype(o_ref.dtype)              # VPU/EUP


def film_layer(x, w, b, freq, phase_shift, *,
               max_tile_n=1024, matmul_dtype=None, out_dtype=jnp.float32):
    """x: (B, N, Din), w: (Din, H), b: (H,), freq/phase: (B, H) -> (B, N, H)."""
    B, N, Din = x.shape
    H = w.shape[1]
    assert freq.shape == phase_shift.shape == (B, H)

    x = x.astype(jnp.float32)
    w = w.astype(jnp.float32)
    b = b.astype(jnp.float32)
    freq = freq.astype(jnp.float32)
    phase_shift = phase_shift.astype(jnp.float32)

    vmem_limit = _vmem_limit_bytes()

    # --- Lane-dense output only when padding is cheap (<= 25% extra columns).
    #     For small H the masked-store path beats 4x write traffic + slice copy.
    Hp = _round_up(H, 128)
    if Hp != H and Hp * 4 <= H * 5:
        w = jnp.pad(w, ((0, 0), (0, Hp - H)))
        b = jnp.pad(b, (0, Hp - H))
        freq = jnp.pad(freq, ((0, 0), (0, Hp - H)))
        phase_shift = jnp.pad(phase_shift, ((0, 0), (0, Hp - H)))
        Hc = Hp
    else:
        Hc = H

    # --- Fold bias into the FiLM affine: sin(f*(xW+b)+p) == sin(f*xW + (f*b+p)),
    #     and pack freq with the fused term into a single (B, 2, Hc) operand.
    ff = jnp.stack([freq, freq * b[None, :] + phase_shift], axis=1)

    if matmul_dtype is not None:
        x = x.astype(matmul_dtype)
        w = w.astype(matmul_dtype)

    # --- H tiling: keep W fully resident when it fits; otherwise tile H. ---
    w_budget = int(vmem_limit * 0.4)
    if Din * Hc * 4 <= w_budget or Hc % 128 != 0:
        th, nh = Hc, 1
    else:
        th = max(128, (w_budget // (2 * Din * 4)) // 128 * 128)
        th = min(th, Hc)
        nh = pl.cdiv(Hc, th)

    # --- N tiling: biggest multiple-of-8 tile fitting the remaining VMEM,
    #     with the weight (its real buffer count), ff and headroom accounted.
    w_bufs = 1 if nh == 1 else 2
    reserved = w_bufs * Din * th * 4 + 2 * (2 * Hc * 4) + (1 << 20)
    avail = max(0, vmem_limit - reserved)
    per_row = 2 * (Din + th) * 4                 # 2x-buffered f32 x-row + out-row
    tn = (avail // per_row) // 8 * 8
    tn = int(max(8, min(tn, max_tile_n, _round_up(N, 8))))
    nn = pl.cdiv(N, tn)                           # ragged last block, no wrapper pad

    # --- Weight BlockSpec: single-buffer when its index_map is constant. ---
    w_index = lambda bi, hi, ni: (0, hi)
    if nh == 1:
        try:
            w_spec = pl.BlockSpec((Din, th), w_index, pipeline_mode=pl.Buffered(1))
        except TypeError:                        # older BlockSpec signature
            w_spec = pl.BlockSpec((Din, th), w_index)
    else:
        w_spec = pl.BlockSpec((Din, th), w_index)

    out = pl.pallas_call(
        film_kernel,
        out_shape=jax.ShapeDtypeStruct((B, N, Hc), out_dtype),
        grid_spec=pltpu.PrefetchScalarGridSpec(
            num_scalar_prefetch=0,
            grid=(B, nh, nn),
            in_specs=[
                pl.BlockSpec((1, tn, Din), lambda bi, hi, ni: (bi, ni, 0)),  # x tile
                w_spec,                                                       # W tile
                pl.BlockSpec((1, 2, th), lambda bi, hi, ni: (bi, 0, hi)),    # freq+fused
            ],
            out_specs=pl.BlockSpec((1, tn, th), lambda bi, hi, ni: (bi, ni, hi)),
        ),
        compiler_params=pltpu.CompilerParams(
            dimension_semantics=("parallel", "parallel", "parallel"),
            vmem_limit_bytes=vmem_limit,
        ),
    )(x, w, ff)

    return out if Hc == H else out[..., :H]


def _reference(x, w, b, freq, phase_shift):
    lin = jnp.einsum("bnd,dh->bnh", x, w) + b
    return jnp.sin(freq[:, None, :] * lin + phase_shift[:, None, :])


if __name__ == "__main__":
    key = jax.random.PRNGKey(0)

    # --- Test 1: small aligned-ish shapes (H=32 -> no lane padding path). ---
    B, N, Din, H = 2, 16, 32, 32
    kx, kw, kb, kf, kp, key = jax.random.split(key, 6)
    bound = 1.0 / jnp.sqrt(jnp.float32(Din))
    w = jax.random.uniform(kw, (Din, H), jnp.float32, -bound, bound)
    b = jax.random.uniform(kb, (H,), jnp.float32, -bound, bound)
    x = jax.random.normal(kx, (B, N, Din), jnp.float32)
    freq = jax.random.normal(kf, (B, H), jnp.float32) * 5.0 + 30.0
    phase_shift = jax.random.normal(kp, (B, H), jnp.float32)

    out = jax.block_until_ready(film_layer(x, w, b, freq, phase_shift))
    ref = _reference(x, w, b, freq, phase_shift)
    assert out.shape == (B, N, H)
    assert jnp.allclose(out, ref, atol=3e-5, rtol=1e-4)

    # --- Test 2: ragged N and cheap H->128 padding path (H=250 -> Hc=256). ---
    B2, N2, Din2, H2 = 1, 21, 16, 250
    kx, kw, kb, kf, kp, key = jax.random.split(key, 6)
    bound2 = 1.0 / jnp.sqrt(jnp.float32(Din2))
    w2 = jax.random.uniform(kw, (Din2, H2), jnp.float32, -bound2, bound2)
    b2 = jax.random.uniform(kb, (H2,), jnp.float32, -bound2, bound2)
    x2 = jax.random.normal(kx, (B2, N2, Din2), jnp.float32)
    freq2 = jax.random.normal(kf, (B2, H2), jnp.float32) * 5.0 + 30.0
    phase2 = jax.random.normal(kp, (B2, H2), jnp.float32)

    out2 = jax.block_until_ready(film_layer(x2, w2, b2, freq2, phase2))
    ref2 = _reference(x2, w2, b2, freq2, phase2)
    assert out2.shape == (B2, N2, H2)
    assert jnp.allclose(out2, ref2, atol=3e-5, rtol=1e-4)

    print("KERNEL_OK")
</pallas_src>

<mosaic_0001>
module attributes {stable_mosaic.version = 11 : i64} {
  func.func @film_kernel(%arg0: i32, %arg1: i32, %arg2: i32, %arg3: memref<1x16x32xf32, #tpu.memory_space<vmem>>, %arg4: memref<32x32xf32, #tpu.memory_space<vmem>>, %arg5: memref<1x2x32xf32, #tpu.memory_space<vmem>>, %arg6: memref<1x16x32xf32, #tpu.memory_space<vmem>>) attributes {dimension_semantics = [#tpu.dimension_semantics<parallel>, #tpu.dimension_semantics<parallel>, #tpu.dimension_semantics<parallel>], iteration_bounds = array<i64: 2, 1, 1>, scalar_prefetch = 0 : i64, scratch_operands = 0 : i64, tpu.core_type = #tpu.core_type<tc>, window_params = [{transform_indices = @transform_0, window_bounds = array<i64: 1, 16, 32>}, {pipeline_mode = #tpu.pipeline_mode<synchronous>, transform_indices = @transform_1, window_bounds = array<i64: 32, 32>}, {transform_indices = @transform_2, window_bounds = array<i64: 1, 2, 32>}, {transform_indices = @transform_3, window_bounds = array<i64: 1, 16, 32>}]} {
    %c0 = arith.constant 0 : index
    %c0_0 = arith.constant 0 : index
    %c0_1 = arith.constant 0 : index
    %0 = vector.load %arg3[%c0, %c0_0, %c0_1] : memref<1x16x32xf32, #tpu.memory_space<vmem>>, vector<1x16x32xf32>
    %1 = vector.shape_cast %0 : vector<1x16x32xf32> to vector<16x32xf32>
    %c0_2 = arith.constant 0 : index
    %c0_3 = arith.constant 0 : index
    %2 = vector.load %arg4[%c0_2, %c0_3] : memref<32x32xf32, #tpu.memory_space<vmem>>, vector<32x32xf32>
    %cst = arith.constant dense<0.000000e+00> : vector<16x32xf32>
    %3 = tpu.matmul %1, %2, %cst {dimension_numbers = #tpu.dot_dimension_numbers<[1], [0], [0], [1], [0, 0, 1, 1], [], []>} : vector<16x32xf32>, vector<32x32xf32>, vector<16x32xf32> -> vector<16x32xf32>
    %c0_4 = arith.constant 0 : index
    %c0_5 = arith.constant 0 : index
    %c0_6 = arith.constant 0 : index
    %4 = vector.load %arg5[%c0_4, %c0_5, %c0_6] : memref<1x2x32xf32, #tpu.memory_space<vmem>>, vector<1x2x32xf32>
    %5 = vector.shape_cast %4 : vector<1x2x32xf32> to vector<2x32xf32>
    %6 = vector.extract_strided_slice %5 {offsets = [0, 0], sizes = [1, 32], strides = [1, 1]} : vector<2x32xf32> to vector<1x32xf32>
    %7 = vector.extract_strided_slice %5 {offsets = [1, 0], sizes = [1, 32], strides = [1, 1]} : vector<2x32xf32> to vector<1x32xf32>
    %8 = vector.broadcast %6 : vector<1x32xf32> to vector<16x32xf32>
    %9 = arith.mulf %8, %3 : vector<16x32xf32>
    %10 = vector.broadcast %7 : vector<1x32xf32> to vector<16x32xf32>
    %11 = arith.addf %9, %10 : vector<16x32xf32>
    %12 = math.sin %11 : vector<16x32xf32>
    %c0_7 = arith.constant 0 : index
    %c0_8 = arith.constant 0 : index
    %c0_9 = arith.constant 0 : index
    %13 = vector.load %arg6[%c0_7, %c0_8, %c0_9] : memref<1x16x32xf32, #tpu.memory_space<vmem>>, vector<1x16x32xf32>
    %14 = vector.shape_cast %13 : vector<1x16x32xf32> to vector<16x32xf32>
    %15 = vector.shape_cast %12 : vector<16x32xf32> to vector<1x16x32xf32>
    tpu.vector_store %arg6[%c0_7, %c0_8, %c0_9], %15 {strides = array<i32>} : memref<1x16x32xf32, #tpu.memory_space<vmem>>, vector<1x16x32xf32>,
    return
  }
  func.func @transform_0(%arg0: i32, %arg1: i32, %arg2: i32) -> (i32, i32, i32) {
    %c0_i32 = arith.constant 0 : i32
    %c0_i32_0 = arith.constant 0 : i32
    return %arg0, %arg2, %c0_i32 : i32, i32, i32
  }
  func.func @transform_1(%arg0: i32, %arg1: i32, %arg2: i32) -> (i32, i32) {
    %c0_i32 = arith.constant 0 : i32
    %c0_i32_0 = arith.constant 0 : i32
    return %c0_i32, %arg1 : i32, i32
  }
  func.func @transform_2(%arg0: i32, %arg1: i32, %arg2: i32) -> (i32, i32, i32) {
    %c0_i32 = arith.constant 0 : i32
    %c0_i32_0 = arith.constant 0 : i32
    return %arg0, %c0_i32, %arg1 : i32, i32, i32
  }
  func.func @transform_3(%arg0: i32, %arg1: i32, %arg2: i32) -> (i32, i32, i32) {
    %c0_i32 = arith.constant 0 : i32
    return %arg0, %arg2, %arg1 : i32, i32, i32
  }
}

</mosaic_0001>

<bundles_post_ra>
// kernel: tpu_custom_call.1
= control target key start
LH: loop header
LB: loop body
LE: loop exit
PB: predicated region body
PF: predicated region fallthrough
CT: control target
= control target key end

     0   :  { %8 = vsyncpa [#allocation3], 0  ;;  %s1347_s0 = inlined_call_operand.hbm [shape: f32[2,16,32], index: 0, kind: input, shape index: {}]   ;;  %s1348_s1 = inlined_call_operand.hbm [shape: f32[32,32], index: 1, kind: input, shape index: {}]   ;;  %s1349_s2 = inlined_call_operand.vmem [shape: f32[2,2,32], index: 2, kind: input, shape index: {}]   ;;  %s1350_s3 = inlined_call_operand.hbm [shape: f32[2,16,32], index: 3, kind: output, shape index: {}]  }
   0x1   :  { %10 = vsyncpa [#allocation3 + $0x1], 0 }
   0x2   :  { %11 = vsyncpa [#allocation6], 0 }
   0x3   :  { %12 = vsyncpa [#allocation4], 0 }
   0x4   :  { %14 = vsyncpa [#allocation4 + $0x1], 0  ;;  %s1047_s12 = smov 0   ;;  %s1049_s13 = smov 0  }
   0x5   :  { %s1051_s14 = smov 0   ;;  %s1053_s15 = smov 0  }
   0x6   :  { %s1055_s16 = smov 0   ;;  %s1057_s17 = smov 0  }
   0x7 LB: > { %s714_s18 = sadd.s32 4294967295, %s1012_s17   ;;  %s715_s19 = sadd.s32 4294967294, %s1012_s17   ;;  %s1012_s17 = sphi %s1057_s17, %s20_s17   ;;  %s1008_s16 = sphi %s1055_s16, %s1374_s16   ;;  %s1004_s15 = sphi %s1053_s15, %s1373_s15   ;;  %s1000_s14 = sphi %s1051_s14, %s1372_s14   ;;  %s996_s13 = sphi %s1049_s13, %s1371_s13   ;;  %s992_s12 = sphi %s1047_s12, %s1370_s12  }
   0x8   : > { %p61_p0 = scmp.ne.s32.totalorder %s996_s13, %s992_s12  ;;  %p1081_p1 = scmp.eq.s32.totalorder %s714_s18, 0 }
   0x9   : > { %p1085_p2 = scmp.eq.s32.totalorder %s714_s18, 1  ;;  %p149_p3 = scmp.eq.s32.totalorder %s715_s19, 1 }
   0xa   : > { %s1355_s20 = scalar_select %p1081_p1, 1, 0 }
   0xb   : > { %s1356_s21 = scalar_select %p1085_p2, 1, 0 }
   0xc   : > { %p1091_p4 = por %p1081_p1, %p61_p0  ;;  %p716_p5 = scmp.ge.s32.totalorder %s1012_s17, 1 }
   0xd   : > { %p1096_p6 = por %p149_p3, %p61_p0  ;;  %p156_p7 = scmp.lt.s32.totalorder %s1012_s17, 3 }
   0xe   : > { %s1357_s22 = scalar_select %p1091_p4, 1, 0 }
   0xf   : > { %s1358_s23 = scalar_select %p1096_p6, 1, 0 }
  0x10   : > { %p1101_p8 = pnand %p716_p5, %p156_p7  ;;  %s1014_s25 = smov [#allocation5]  }
  0x11   : > { %s170_s26 = sshll.u32 %s1014_s25, 4  ;;  %s39_s28 = sadd.s32 1, %s1008_s16  ;;  %s171_s26 = int_to_ptr.vmem [resolvable:$true] %s170_s26 }
  0x12   : > { %s1359_s24 = scalar_select %p1101_p8, 1, 0 }
  0x13   : > { %p785_p9 = pneg %p1101_p8  ;;  %s868_s4 = scalar_lea.hbm %s1348_s1, 512 }
  0x14   : > { %p869_p12 = scmp.ne.s32.totalorder %s1348_s1, %s868_s4  ;;  %p875_p5 = scmp.lt.u32.totalorder %s868_s4, %s1348_s1 }
  0x15   : > { %p1110_p11 = pnand %p785_p9, %p1081_p1 }
  0x17   : > { %p870_p13 = pneg %p1110_p11 }
  0x19   : > { %p871_p0 = pnand %p870_p13, %p869_p12 }
  0x1b   : > { %p872_p3 = pneg %p871_p0 }
  0x1d   : > { %p877_p7 = pnand %p875_p5, %p872_p3 }
  0x1f   : > { %880 = shalt.err (!%p877_p7)
}
  0x20   : > { %s881_s9 = scalar_lea.vmem %s171_s26, 512  ;;  %p889_p1 = scmp.lt.s32.totalorder %s171_s26, %s171_s26 }
  0x21   : > { %p882_p9 = scmp.ne.s32.totalorder %s171_s26, %s881_s9  ;;  %p890_p4 = scmp.lt.s32.totalorder %s881_s9, %s881_s9 }
  0x23   : > { %p884_p10 = pnand %p882_p9, %p870_p13  ;;  %p891_p8 = por %p890_p4, %p889_p1 }
  0x25   : > { %p885_p6 = pneg %p884_p10 }
  0x27   : > { %p892_p2 = pnand %p891_p8, %p885_p6 }
  0x29   : > { %895 = shalt.err (!%p892_p2)
}
  0x2a   : > { %s1015_s10 = smov 128   ;;  %s1016_s11 = smov 8  }
  0x2b   : > { %788 = dma.hbm_to_vmem [thread:$0]  (!%p1110_p11), %s1348_s1, 512, %s171_s26, [#allocation6], %s1015_s10, %s1015_s10, %s1016_s11  }
  0x2c   : > { %p41_p1 = scmp.ge.s32.totalorder %s39_s28, 2  ;;  %s48_s25 = sadd.s32 1, %s1000_s14 }
  0x2d   : > { %p55_p2 = scmp.ne.s32.totalorder %s1000_s14, %s996_s13  ;;  %p56_p4 = scmp.eq.s32.totalorder %s1012_s17, 0 }
  0x2e   : > { %s1376_s28 = smov (%p41_p1, %s39_s28), 0  ;;  %p1362_p8 = scmp.ne.s32.totalorder %s1356_s21, 0 }
  0x2f   : > { %p1140_p6 = por %p56_p4, %p55_p2  ;;  %s43_s30 = ssub.s32 %s1008_s16, %s1376_s28 }
  0x30   : > { %p1146_p10 = por %p1362_p8, %p55_p2  ;;  %p798_p12 = scmp.lt.s32.totalorder %s1012_s17, 2 }
  0x31   : > { %p46_p11 = scmp.eq.s32.totalorder %s43_s30, 0  ;;  %s184_s26 = sand.u32 1, %s1000_s14  }
  0x32   : > { %s719_s4 = sshll.u32 %s184_s26, 4  ;;  %s742_s6 = sshll.u32 %s1008_s16, 8 }
  0x33   : > { %s1155_s5 = scalar_select %p46_p11, %s1000_s14, %s48_s25  }
  0x34   : > { %s1161_s9 = scalar_lea.hbm %s1347_s0, %s742_s6  ;;  %s188_s21 = scalar_lea.vmem [#allocation2], %s719_s4 }
  0x35   : > { %s197_s18 = sshll.u32 %s188_s21, 4  ;;  %p1167_p13 = pnand %p798_p12, %p1140_p6  ;;  %s1163_s18 = int_to_ptr.vmem [resolvable:$true] %s197_s18 }
  0x36   : > { %s1171_s25 = scalar_lea.sflag [#allocation3], %s184_s26  ;;  %s896_s30 = scalar_lea.hbm %s1161_s9, 256 }
  0x37   : > { %p897_p0 = scmp.ne.s32.totalorder %s1161_s9, %s896_s30  ;;  %p898_p3 = pneg %p1167_p13 }
  0x38   : > { %s901_s29 = scalar_lea.hbm %s1347_s0, 512  ;;  %p902_p9 = scmp.lt.u32.totalorder %s1161_s9, %s1347_s0 }
  0x39   : > { %p899_p5 = pnand %p898_p3, %p897_p0  ;;  %p903_p1 = scmp.lt.u32.totalorder %s901_s29, %s896_s30 }
  0x3a   : > { %p905_p4 = scmp.lt.u32.totalorder %s896_s30, %s1161_s9 }
  0x3b   : > { %p900_p7 = pneg %p899_p5  ;;  %p904_p2 = por %p903_p1, %p902_p9 }
  0x3d   : > { %p906_p6 = por %p905_p4, %p904_p2 }
  0x3f   : > { %p907_p8 = pnand %p906_p6, %p900_p7 }
  0x41   : > { %910 = shalt.err (!%p907_p8)
}
  0x42   : > { %s911_s26 = scalar_lea.vmem %s1163_s18, 256  ;;  %s1017_s21 = smov [#allocation2]  }
  0x43   : > { %p912_p12 = scmp.ne.s32.totalorder %s1163_s18, %s911_s26  ;;  %s916_s4 = sshll.u32 %s1017_s21, 4  ;;  %s917_s4 = int_to_ptr.vmem [resolvable:$false] %s916_s4 }
  0x44   : > { %s918_s6 = scalar_lea.vmem %s917_s4, 512  ;;  %p919_p5 = scmp.lt.s32.totalorder %s1163_s18, %s917_s4 }
  0x45   : > { %p914_p11 = pnand %p912_p12, %p898_p3  ;;  %p920_p9 = scmp.lt.s32.totalorder %s918_s6, %s911_s26 }
  0x47   : > { %p915_p0 = pneg %p914_p11  ;;  %p921_p1 = por %p920_p9, %p919_p5 }
  0x49   : > { %p922_p2 = pnand %p921_p1, %p915_p0 }
  0x4b   : > { %925 = shalt.err (!%p922_p2)
}
  0x4c   : > { %792 = dma.hbm_to_vmem [thread:$0]  (!%p1167_p13), %s1161_s9, 256, %s1163_s18, %s1171_s25, %s1015_s10, %s1015_s10, %s1016_s11  }
  0x4d   : > { %p1365_p3 = scmp.ne.s32.totalorder %s1359_s24, 0 }
  0x4e   : > { %s1205_s30 = sand.u32 (!%p1365_p3), 1, %s996_s13   ;;  %p1366_p7 = scmp.ne.s32.totalorder (!%p1365_p3), %s1357_s22, 0 }
  0x4f   : > { %219 = sbr.rel (%p1365_p3) target bundleno = 421 (0x1a5), region = 32  ;;  %s723_s29 = sshll.u32 (!%p1365_p3), %s1205_s30, 4 }
  0x50   : > { %s222_s7 = scalar_lea.sflag (!%p1365_p3), [#allocation3], %s1205_s30  ;;  %s225_s19 = scalar_lea.vmem (!%p1365_p3), [#allocation2], %s723_s29 }
  0x56   : > { %979 = dma.done.wait (%p1366_p7), %s222_s7, 256  }
  0x57   : > { %981 = vsyncadd (%p1366_p7), %s222_s7, 4294967040  ;;  %p1367_p13 = scmp.ne.s32.totalorder %s1355_s20, 0 }
  0x59   : > { %983 = dma.done.wait (%p1367_p13), [#allocation6], 512  }
  0x5a   : > { %985 = vsyncadd (%p1367_p13), [#allocation6], 4294966784  ;;  %vm274_vm0 = vcmask 261120   ;;  %v270_v0 = vld [vmem:[#allocation5] sm:$0xff]  ;;  %v271_v1 = vld [vmem:[#allocation5 + $0x8] sm:$0xff]  ;;  %p260_p4 = scmp.lt.s32.totalorder %s1004_s15, 1  ;;  %v357_v8 = vlaneseq }
  0x5b   : > { %v272_v2 = vld [vmem:[#allocation5 + $0x10] sm:$0xff]  ;;  %v761_v3 = vpack.c.bf16 %v271_v1, %v270_v0  ;;  %v273_v4 = vld [vmem:[#allocation5 + $0x18] sm:$0xff]  ;;  %v1018_v41 = vmov 683565275   ;;  %v1019_v45 = vmov 2475754826  }
  0x5c   : > { %v268_v5 = vld [vmem:[%s225_s19] sm:$0xff]  ;;  %v765_v6 = vpack.c.bf16 %v273_v4, %v272_v2  ;;  %v269_v7 = vld [vmem:[%s225_s19 + $0x8] sm:$0xff]  ;;  %s261_s20 = scalar_select %p260_p4, %s1004_s15, 1  ;;  %v358_v9 = vshrl.u32 %v357_v8, 7  ;;  %v1020_v47 = vmov 2131351028  }
  0x5d   : > { %758 = vmatprep.mubr.msk.f32.mxu0 %vm274_vm0, %v268_v5  ;;  %762 = vmatprep.subr.bf16.mxu0 %v761_v3  ;;  %v1021_v49 = vmov 2102212464   ;;  %v1022_v51 = vmov 920167782   ;;  %v1023_v58 = vmov 1326507024  }
  0x5e   : > { %764 = vmatpush3.bf16.msra.mxu0 %v761_v3  ;;  %s726_s22 = sshll.u32 %s261_s20, 1  ;;  %v359_v10 = vsub.s32 0, %v358_v9  ;;  %v365_v12 = vsub.s32 1, %v358_v9  ;;  %s258_s9 = scalar_lea.vmem [#allocation7], %s723_s29 }
  0x5f   : > { %766 = vmatprep.subr.bf16.mxu0 %v765_v6  ;;  %s266_s11 = scalar_lea.vmem %s1349_s2, %s726_s22  ;;  %s743_s18 = sshll.u32 %s1004_s15, 8 }
  0x60   : > { %v356_v11 = vld [vmem:[%s266_s11] sm:$0x3]  ;;  %s596_s25 = sshll.u32 %s258_s9, 4  ;;  %s1294_s21 = scalar_lea.hbm %s1350_s3, %s743_s18  ;;  %s1296_s25 = int_to_ptr.vmem [resolvable:$true] %s596_s25 }
  0x61   : > { %v360_v13 = vrot.slane %v356_v11, %v359_v10  ;;  %v366_v14 = vrot.slane %v356_v11, %v365_v12  ;;  %s580_s15 = scalar_lea.sflag [#allocation4], %s1205_s30  ;;  %s926_s4 = scalar_lea.vmem %s1296_s25, 256 }
  0x62   : > { %768 = vmatpush3.bf16.msra.mxu0 %v765_v6  ;;  %p927_p6 = scmp.ne.s32.totalorder %s1296_s25, %s926_s4  ;;  %s1024_s6 = smov [#allocation7]  }
  0x63   : > { %s930_s29 = sshll.u32 %s1024_s6, 4  ;;  %s931_s29 = int_to_ptr.vmem [resolvable:$false] %s930_s29 }
  0x64   : > { %p928_p8 = pnand %p927_p6, %p1146_p10  ;;  %s932_s7 = scalar_lea.vmem %s931_s29, 512 }
  0x65   : > { %759 = vmatmul.mubr.msk.f32.vlgmr.msra.gmra.mrb[0].mxu0 %vm274_vm0, %v269_v7  ;;  %p933_p11 = scmp.lt.s32.totalorder %s1296_s25, %s931_s29  ;;  %p934_p0 = scmp.lt.s32.totalorder %s932_s7, %s926_s4 }
  0x66   : > { %p929_p12 = pneg %p928_p8 }
  0x67   : > { %p935_p5 = por %p934_p0, %p933_p11 }
  0x69   : > { %p936_p9 = pnand %p935_p5, %p929_p12 }
 0x138   : > { %v760_v15 = vpop.f32.mrb[0].mxu0 }
 0x139   : > { %v362_v16 = vmul.f32 %v760_v15, %v360_v13  ;;  %v347_v17 = vpop.f32.mrb[1].mxu0 }
 0x13a   : > { %v361_v18 = vmul.f32 %v360_v13, %v347_v17 }
 0x13b   : > { %v1226_v19 = vadd.f32 %v366_v14, %v362_v16 }
 0x13c   : > { %v1228_v20 = vadd.f32 %v366_v14, %v361_v18 }
 0x13d   : > { %v473_v21 = vand.u32 2147483647, %v1226_v19  ;;  %v476_v22 = vand.u32 2139095040, %v1226_v19  ;;  %vm475_vm15 = vcmp.lt.s32.totalorder %v1226_v19, 0 }
 0x13e   : > { %v372_v23 = vand.u32 2139095040, %v1228_v20  ;;  %v369_v26 = vand.u32 2147483647, %v1228_v20 }
 0x13f   : > { %v477_v24 = vshrl.u32 %v476_v22, 23  ;;  %v480_v25 = vand.u32 8388607, %v473_v21 }
 0x140   : > { %v373_v27 = vshrl.u32 %v372_v23, 23  ;;  %v1238_v32 = vand.u32 8388607, %v369_v26 }
 0x141   : > { %v733_v28 = vadd.s32 4294967169, %v477_v24  ;;  %v481_v31 = vor.u32 8388608, %v480_v25 }
 0x142   : > { %v729_v29 = vadd.s32 4294967169, %v373_v27  ;;  %v377_v39 = vor.u32 8388608, %v1238_v32 }
 0x143   : > { %v483_v30 = vadd.s32 1, %v733_v28  ;;  %v1240_v38 = vshll.u32 %v481_v31, 8 }
 0x144   : > { %v379_v33 = vadd.s32 1, %v729_v29 }
 0x145   : > { %vm484_vm1 = vcmp.gt.s32.totalorder %v483_v30, 0 }
 0x146   : > { %v485_v34 = vsel %vm484_vm1, %v483_v30, 0  ;;  %vm380_vm2 = vcmp.gt.s32.totalorder %v379_v33, 0  ;;  %vm474_vm1 = vcmp.le.f32.partialorder %v473_v21, 0.7853982 }
 0x147   : > { %v486_v35 = vshrl.u32 %v485_v34, 5  ;;  %v487_v36 = vand.u32 31, %v485_v34  ;;  %v381_v37 = vsel %vm380_vm2, %v379_v33, 0  ;;  %v417_v33 = vshll.u32 %v377_v39, 8 }
 0x148   : > { %v1243_v43 = vshrl.u32 %v381_v37, 5  ;;  %v383_v44 = vand.u32 31, %v381_v37  ;;  %vm371_vm2 = vcmp.lt.s32.totalorder %v1228_v20, 0 }
 0x149   : > { %v488_v40 = vsub.s32 32, %v487_v36  ;;  %v490_v42 = vshll.u32 %v1018_v41, %v487_v36  ;;  %v493_v46 = vshll.u32 %v1019_v45, %v487_v36  ;;  %v496_v48 = vshll.u32 %v1020_v47, %v487_v36 }
 0x14a   : > { %v499_v50 = vshll.u32 %v1021_v49, %v487_v36  ;;  %v502_v52 = vshll.u32 %v1022_v51, %v487_v36  ;;  %vm505_vm3 = vcmp.lt.s32.totalorder %v486_v35, 1  ;;  %vm506_vm4 = vcmp.lt.s32.totalorder %v486_v35, 2 }
 0x14b   : > { %v491_v53 = vshrl.u32 %v1019_v45, %v488_v40  ;;  %v494_v54 = vshrl.u32 %v1020_v47, %v488_v40  ;;  %v497_v55 = vshrl.u32 %v1021_v49, %v488_v40  ;;  %v489_v56 = vshrl.u32 %v1018_v41, %v488_v40 }
 0x14c   : > { %v500_v57 = vshrl.u32 %v1022_v51, %v488_v40  ;;  %v503_v59 = vshrl.u32 %v1023_v58, %v488_v40  ;;  %v384_v63 = vsub.s32 32, %v383_v44  ;;  %vm507_vm5 = vcmp.lt.s32.totalorder %v486_v35, 3 }
 0x14d   : > { %v492_v60 = vor.u32 %v491_v53, %v490_v42  ;;  %v495_v61 = vor.u32 %v494_v54, %v493_v46  ;;  %v498_v62 = vor.u32 %v497_v55, %v496_v48  ;;  %vm508_vm6 = vcmp.lt.s32.totalorder %v486_v35, 4 }
 0x14e   : > { %v501_v0 = vor.u32 %v500_v57, %v499_v50  ;;  %v504_v1 = vor.u32 %v503_v59, %v502_v52  ;;  %v386_v9 = vshll.u32 %v1018_v41, %v383_v44  ;;  %v387_v12 = vshrl.u32 %v1019_v45, %v384_v63 }
 0x14f   : > { %v509_v2 = vsel %vm505_vm3, %v489_v56, %v492_v60  ;;  %v510_v3 = vsel %vm508_vm6, %v498_v62, 2102212464  ;;  %v513_v4 = vsel %vm505_vm3, %v492_v60, %v495_v61  ;;  %v517_v5 = vsel %vm505_vm3, %v495_v61, %v498_v62 }
 0x150   : > { %v511_v6 = vsel %vm507_vm5, %v495_v61, %v510_v3  ;;  %v514_v7 = vsel %vm508_vm6, %v501_v0, 920167782  ;;  %v518_v8 = vsel %vm508_vm6, %v504_v1, 1326507024  ;;  %v389_v13 = vshll.u32 %v1019_v45, %v383_v44 }
 0x151   : > { %v515_v10 = vsel %vm507_vm5, %v498_v62, %v514_v7  ;;  %v519_v11 = vsel %vm507_vm5, %v501_v0, %v518_v8  ;;  %v512_v14 = vsel %vm506_vm4, %v509_v2, %v511_v6  ;;  %v390_v17 = vshrl.u32 %v1020_v47, %v384_v63 }
 0x152   : > { %v516_v15 = vsel %vm506_vm4, %v513_v4, %v515_v10  ;;  %v520_v16 = vsel %vm506_vm4, %v517_v5, %v519_v11  ;;  %v388_v25 = vor.u32 %v387_v12, %v386_v9  ;;  %v392_v28 = vshll.u32 %v1020_v47, %v383_v44 }
 0x153   : > { %v1252_v18 = vmul.u32.u64.low %v1240_v38, %v520_v16  ;;  %v1253_v22 = vmul.u32.u64.high %v1240_v38, %v520_v16, %v1252_v18  ;;  %v1256_v23 = vmul.u32.u64.low %v1240_v38, %v516_v15  ;;  %v1257_v24 = vmul.u32.u64.high %v1240_v38, %v516_v15, %v1256_v23 }
 0x154   : > { %v391_v27 = vor.u32 %v390_v17, %v389_v13  ;;  %v393_v29 = vshrl.u32 %v1021_v49, %v384_v63  ;;  %v395_v30 = vshll.u32 %v1021_v49, %v383_v44  ;;  %v396_v31 = vshrl.u32 %v1022_v51, %v384_v63 }
 0x155   : > { %v399_v32 = vshrl.u32 %v1023_v58, %v384_v63  ;;  %v528_v34 = vmul.u32 %v1240_v38, %v512_v14  ;;  %v385_v35 = vshrl.u32 %v1018_v41, %v384_v63  ;;  %v398_v37 = vshll.u32 %v1022_v51, %v383_v44 }
 0x156   : > { %v394_v36 = vor.u32 %v393_v29, %v392_v28  ;;  %vm530_vm7 = vc.u32 %v1253_v22, %v1256_v23  ;;  %v531_v40 = vadd.s32 1, %v1257_v24  ;;  %v397_v42 = vor.u32 %v396_v31, %v395_v30 }
 0x157   : > { %vm401_vm8 = vcmp.lt.s32.totalorder %v1243_v43, 1  ;;  %v400_v45 = vor.u32 %v399_v32, %v398_v37  ;;  %vm403_vm9 = vcmp.lt.s32.totalorder %v1243_v43, 3  ;;  %vm404_vm10 = vcmp.lt.s32.totalorder %v1243_v43, 4 }
 0x158   : > { %v409_v46 = vsel %vm401_vm8, %v388_v25, %v391_v27  ;;  %v532_v39 = vsel %vm530_vm7, %v531_v40, %v1257_v24  ;;  %v406_v47 = vsel %vm404_vm10, %v394_v36, 2102212464  ;;  %v410_v38 = vsel %vm404_vm10, %v397_v42, 920167782 }
 0x159   : > { %v413_v41 = vsel %vm401_vm8, %v391_v27, %v394_v36  ;;  %v533_v48 = vadd.s32 %v532_v39, %v528_v34  ;;  %vm402_vm11 = vcmp.lt.s32.totalorder %v1243_v43, 2  ;;  %v411_v44 = vsel %vm403_vm9, %v394_v36, %v410_v38 }
 0x15a   : > { %v414_v49 = vsel %vm404_vm10, %v400_v45, 1326507024  ;;  %v405_v50 = vsel %vm401_vm8, %v385_v35, %v388_v25  ;;  %v407_v51 = vsel %vm403_vm9, %v391_v27, %v406_v47  ;;  %v412_v52 = vsel %vm402_vm11, %v409_v46, %v411_v44 }
 0x15b   : > { %v415_v53 = vsel %vm403_vm9, %v397_v42, %v414_v49  ;;  %v534_v54 = vadd.s32 536870912, %v533_v48  ;;  %v1267_v56 = vmul.u32.u64.low %v417_v33, %v412_v52  ;;  %v1268_v57 = vmul.u32.u64.high %v417_v33, %v412_v52, %v1267_v56 }
 0x15c   : > { %v416_v55 = vsel %vm402_vm11, %v413_v41, %v415_v53  ;;  %v408_v61 = vsel %vm402_vm11, %v405_v50, %v407_v51  ;;  %v529_v13 = vadd.s32 %v1256_v23, %v1253_v22  ;;  %vm370_vm3 = vcmp.le.f32.partialorder %v369_v26, 0.7853982 }
 0x15d   : > { %v1270_v58 = vmul.u32.u64.low %v417_v33, %v416_v55  ;;  %v1271_v59 = vmul.u32.u64.high %v417_v33, %v416_v55, %v1270_v58  ;;  %v535_v60 = vshrl.u32 %v534_v54, 30  ;;  %v427_v63 = vadd.s32 1, %v1268_v57 }
 0x15e   : > { %v424_v43 = vmul.u32 %v417_v33, %v408_v61  ;;  %vm565_vm7 = vweird.f32 %v1226_v19  ;;  %vm461_vm11 = vweird.f32 %v1228_v20 }
 0x15f   : > { %v536_v62 = vshll.u32 %v535_v60, 30  ;;  %vm426_vm12 = vc.u32 %v1271_v59, %v1267_v56  ;;  %v425_v34 = vadd.s32 %v1267_v56, %v1271_v59  ;;  %v559_v23 = vsub.s32 4, %v535_v60 }
 0x160   : > { %v428_v1 = vsel %vm426_vm12, %v427_v63, %v1268_v57 }
 0x161   : > { %v537_v0 = vsub.s32 %v533_v48, %v536_v62  ;;  %v429_v2 = vadd.s32 %v428_v1, %v424_v43  ;;  %v560_v38 = vsel %vm475_vm15, %v559_v23, %v535_v60 }
 0x162   : > { %v562_v44 = vsel %vm474_vm1, 0, %v560_v38 }
 0x163   : > { %v539_v3 = vsub.s32 0, %v537_v0  ;;  %v430_v4 = vadd.s32 536870912, %v429_v2  ;;  %v566_v53 = vadd.s32 3, %v562_v44 }
 0x165   : > { %v734_v5 = vmin.u32 %v539_v3, %v537_v0  ;;  %v431_v6 = vshrl.u32 %v430_v4, 30  ;;  %v567_v56 = vand.u32 3, %v566_v53 }
 0x167   : > { %v541_v7 = vclz %v734_v5  ;;  %v432_v8 = vshll.u32 %v431_v6, 30  ;;  %v455_v52 = vsub.s32 4, %v431_v6  ;;  %vm572_vm4 = vcmp.eq.s32.totalorder %v567_v56, 2 }
 0x168   : > { %vm569_vm5 = vcmp.eq.s32.totalorder %v567_v56, 0  ;;  %vm568_vm6 = vcmp.lt.s32.totalorder %v567_v56, 2 }
 0x169   : > { %v735_v9 = vadd.s32 4294967294, %v541_v7  ;;  %v433_v10 = vsub.s32 %v429_v2, %v432_v8  ;;  %v456_v55 = vsel %vm371_vm2, %v455_v52, %v431_v6 }
 0x16a   : > { %v458_v59 = vsel %vm370_vm3, 0, %v456_v55 }
 0x16b   : > { %vm736_vm13 = vcmp.lt.s32.totalorder %v735_v9, 0  ;;  %v435_v12 = vsub.s32 0, %v433_v10  ;;  %v462_v43 = vadd.s32 3, %v458_v59 }
 0x16c   : > { %v544_v11 = vsel %vm736_vm13, 0, %v735_v9 }
 0x16d   : > { %v545_v14 = vsub.s32 32, %v544_v11  ;;  %v549_v15 = vsub.s32 4294967266, %v544_v11  ;;  %v730_v16 = vmin.u32 %v435_v12, %v433_v10  ;;  %v546_v17 = vshll.u32 %v537_v0, %v544_v11 }
 0x16e   : > { %v463_v2 = vand.u32 3, %v462_v43 }
 0x16f   : > { %v547_v18 = vshrl.u32 %v529_v13, %v545_v14  ;;  %v550_v24 = vadd.s32 127, %v549_v15  ;;  %v437_v25 = vclz %v730_v16 }
 0x170   : > { %vm468_vm8 = vcmp.eq.s32.totalorder %v463_v2, 2  ;;  %vm465_vm9 = vcmp.eq.s32.totalorder %v463_v2, 0  ;;  %vm464_vm10 = vcmp.lt.s32.totalorder %v463_v2, 2 }
 0x171   : > { %v548_v27 = vor.u32 %v547_v18, %v546_v17  ;;  %v551_v28 = vshll.u32 %v550_v24, 23  ;;  %v731_v29 = vadd.s32 4294967294, %v437_v25 }
 0x173   : > { %v552_v30 = vor.u32 4788187, %v551_v28  ;;  %vm732_vm14 = vcmp.lt.s32.totalorder %v731_v29, 0  ;;  %v555_v32 = vcvt.s32.f32 %v548_v27 }
 0x174   : > { %v440_v33 = vsel %vm732_vm14, 0, %v731_v29 }
 0x175   : > { %v553_v31 = vand.u32 2147483647, %v552_v30  ;;  %v441_v35 = vsub.s32 32, %v440_v33  ;;  %v445_v36 = vsub.s32 4294967266, %v440_v33  ;;  %v442_v37 = vshll.u32 %v433_v10, %v440_v33 }
 0x177   : > { %v556_v22 = vmul.f32 %v555_v32, %v553_v31  ;;  %v443_v40 = vshrl.u32 %v425_v34, %v441_v35  ;;  %v446_v42 = vadd.s32 127, %v445_v36 }
 0x179   : > { %v557_v45 = vxor.u32 2147483648, %v556_v22  ;;  %v444_v46 = vor.u32 %v443_v40, %v442_v37  ;;  %v447_v39 = vshll.u32 %v446_v42, 23 }
 0x17b   : > { %v558_v47 = vsel %vm475_vm15, %v557_v45, %v556_v22  ;;  %v448_v48 = vor.u32 4788187, %v447_v39  ;;  %v451_v50 = vcvt.s32.f32 %v444_v46 }
 0x17c   : > { %v561_v41 = vsel %vm474_vm1, %v1226_v19, %v558_v47 }
 0x17d   : > { %860 = vcosq.f32 %v561_v41  ;;  %v449_v49 = vand.u32 2147483647, %v448_v48 }
 0x17e   : > { %862 = vsinq.f32 %v561_v41 }
 0x17f   : > { %v452_v51 = vmul.f32 %v451_v50, %v449_v49 }
 0x181   : > { %v453_v54 = vxor.u32 2147483648, %v452_v51 }
 0x183   : > { %v454_v21 = vsel %vm371_vm2, %v453_v54, %v452_v51 }
 0x184   : > { %v457_v57 = vsel %vm370_vm3, %v1228_v20, %v454_v21 }
 0x185   : > { %864 = vcosq.f32 %v457_v57 }
 0x186   : > { %866 = vsinq.f32 %v457_v57 }
 0x187   : > { %v861_v58 = vpop.eup %860 }
 0x188   : > { %v863_v60 = vpop.eup %862  ;;  %v573_v61 = vxor.u32 2147483648, %v861_v58 }
 0x189   : > { %v570_v62 = vxor.u32 2147483648, %v863_v60 }
 0x18a   : > { %v574_v63 = vsel %vm572_vm4, %v573_v61, %v863_v60 }
 0x18b   : > { %v571_v26 = vsel %vm569_vm5, %v861_v58, %v570_v62 }
 0x18c   : > { %v575_v0 = vsel %vm568_vm6, %v571_v26, %v574_v63 }
 0x18d   : > { %v576_v1 = vsel %vm565_vm7, nan, %v575_v0 }
 0x18e   : > { %578 = vst.msk [vmem:[%s258_s9 + $0x8] sm:$0xff] %vm274_vm0, %v576_v1 }
 0x18f   : > { %v865_v3 = vpop.eup %864 }
 0x190   : > { %v867_v4 = vpop.eup %866  ;;  %v469_v5 = vxor.u32 2147483648, %v865_v3 }
 0x191   : > { %v466_v6 = vxor.u32 2147483648, %v867_v4 }
 0x192   : > { %v470_v7 = vsel %vm468_vm8, %v469_v5, %v867_v4 }
 0x193   : > { %v467_v19 = vsel %vm465_vm9, %v865_v3, %v466_v6 }
 0x194   : > { %v471_v8 = vsel %vm464_vm10, %v467_v19, %v470_v7 }
 0x195   : > { %v472_v9 = vsel %vm461_vm11, nan, %v471_v8 }
 0x196   : > { %577 = vst.msk [vmem:[%s258_s9] sm:$0xff] %vm274_vm0, %v472_v9 }
 0x197   : > { %939 = shalt.err (!%p936_p9)
}
 0x198   : > { %s940_s19 = scalar_lea.hbm %s1294_s21, 256  ;;  %s944_s24 = scalar_lea.hbm %s1350_s3, 512 }
 0x199   : > { %p941_p1 = scmp.ne.s32.totalorder %s1294_s21, %s940_s19  ;;  %p945_p7 = scmp.lt.u32.totalorder %s1294_s21, %s1350_s3 }
 0x19a   : > { %p946_p13 = scmp.lt.u32.totalorder %s944_s24, %s940_s19  ;;  %p948_p6 = scmp.lt.u32.totalorder %s940_s19, %s1294_s21 }
 0x19b   : > { %p942_p2 = pnand %p941_p1, %p1146_p10 }
 0x19c   : > { %p947_p4 = por %p946_p13, %p945_p7 }
 0x19d   : > { %p943_p3 = pneg %p942_p2 }
 0x19e   : > { %p949_p8 = por %p948_p6, %p947_p4 }
 0x1a0   : > { %p950_p12 = pnand %p949_p8, %p943_p3 }
 0x1a2   : > { %953 = shalt.err (!%p950_p12)
}
 0x1a3   : > { %s1025_s9 = smov 128   ;;  %s1026_s18 = smov 8  }
 0x1a4   : > { %783 = dma.vmem_to_hbm [thread:$0]  (%p1146_p10), %s1296_s25, 256, %s1294_s21, %s580_s15, %s1025_s9, %s1025_s9, %s1026_s18  }
 0x1a5 PF: > { %s611_s8 = sand.u32 1, %s992_s12   ;;  %p1368_p11 = scmp.ne.s32.totalorder %s1358_s23, 0 }
 0x1a6   : > { %p1369_p0 = scmp.ge.s32.totalorder %s1012_s17, 2  ;;  %s612_s26 = scalar_lea.sflag [#allocation4], %s611_s8 }
 0x1a8   : > { %p794_p5 = pnand %p1369_p0, %p1368_p11 }
 0x1aa   : > { %987 = dma.done.wait (!%p794_p5), %s612_s26, 256  }
 0x1ab   : > { %989 = vsyncadd (!%p794_p5), %s612_s26, 4294967040  ;;  %s20_s17 = sadd.s32 1, %s1012_s17   ;;  %s1370_s12 = smov %s996_s13 }
 0x1ac   : > { %p17_p9 = scmp.ge.s32.totalorder %s20_s17, 4   ;;  %s1371_s13 = smov %s1000_s14 }
 0x1ad   : > { %s1372_s14 = smov %s1155_s5  ;;  %s1373_s15 = smov %s1008_s16 }
 0x1ae   : > { %s1374_s16 = smov %s1376_s28  ;;  %19 = sbr.rel (!%p17_p9) target bundleno = 7 (0x7), region = 85 }
 0x1b5   :  { %617 = vsyncpa [#allocation3], 1 }
 0x1b6   :  { %619 = vsyncpa [#allocation3 + $0x1], 1 }
 0x1b7   :  { %620 = vsyncpa [#allocation6], 1 }
 0x1b8   :  { %621 = vsyncpa [#allocation4], 1 }
 0x1b9   :  { %623 = vsyncpa [#allocation4 + $0x1], 1 }

</bundles_post_ra>
